<compile_context>
chip_gen: v6e
topology: v6e:2x2x1
jax: 0.10.0
libtpu: 0.0.40
codegen_flags: <defaults>
</compile_context>

<pallas_src>
import jax
import jax.numpy as jnp
from jax.experimental import pallas as pl
from jax.experimental.pallas import tpu as pltpu

_LANE = 128
_MAX_COLS = 32 * 1024            # lane-dense column cap (multiple of 128)
_SMALL_BYTES = 4 * 1024 * 1024   # "copy whole thing as one full-extent block" cap


# ---------------------------------------------------------------------------
# Primary path: no data movement at all (output aliases the input HBM buffer).
# ---------------------------------------------------------------------------
def _identity_alias_kernel(x_ref, o_ref):
    # o_ref aliases x_ref's HBM buffer (input_output_aliases={0: 0}); the bytes
    # are already where they need to be, so there is nothing to move.
    del x_ref, o_ref


def _identity_impl(x):
    if x.size == 0:
        return x
    return pl.pallas_call(
        _identity_alias_kernel,
        out_shape=jax.ShapeDtypeStruct(x.shape, x.dtype),
        in_specs=[pl.BlockSpec(memory_space=pl.ANY)],
        out_specs=pl.BlockSpec(memory_space=pl.ANY),
        input_output_aliases={0: 0},   # output == input HBM buffer
        compiler_params=pltpu.CompilerParams(has_side_effects=True),
    )(x)


identity = jax.jit(_identity_impl)
# Truly in-place variant: caller donates the input buffer (do not reuse it).
identity_donated = jax.jit(_identity_impl, donate_argnums=0)


# ---------------------------------------------------------------------------
# Fallback path: streaming copy into a genuinely distinct output buffer.
# ---------------------------------------------------------------------------
def _identity_copy_kernel(x_ref, o_ref):
    o_ref[...] = x_ref[...]


def _min_sublane(itemsize: int) -> int:
    # Minimum second-to-last tile dim for the dtype's sublane packing.
    if itemsize >= 4:
        return 8
    if itemsize == 2:
        return 16
    return 32


def _choose_cols(n: int) -> int:
    """Largest lane-dense (multiple-of-128) column count that divides n."""
    m = n // _LANE
    for k in range(min(m, _MAX_COLS // _LANE), 0, -1):
        if m % k == 0:
            return _LANE * k
    return _LANE  # unreachable for m >= 1


def _largest_divisor(n: int, cap: int) -> int:
    for c in range(min(n, cap), 0, -1):
        if n % c == 0:
            return c
    return 1


def _gen_params():
    """(target tile bytes, vmem_limit_bytes) per TPU generation."""
    kind = ""
    try:
        kind = jax.devices()[0].device_kind.lower()
    except Exception:
        pass
    if "v6" in kind:      # v6e: 128 MiB physical VMEM, ~1.4 TB/s HBM
        return 8 * 1024 * 1024, 64 * 1024 * 1024
    if "v7" in kind:      # v7x: 64 MiB VMEM/TC, 3.2 TB/s -> bigger tiles, capped footprint
        return 6 * 1024 * 1024, 40 * 1024 * 1024
    # v5e (16 MiB scoped default) and unknown chips: conservative settings.
    return 4 * 1024 * 1024, 32 * 1024 * 1024


def _tiled_copy(x2d, row_tile, vmem_limit, n_bytes):
    rows, cols = x2d.shape
    return pl.pallas_call(
        _identity_copy_kernel,
        out_shape=jax.ShapeDtypeStruct((rows, cols), x2d.dtype),
        grid=(pl.cdiv(rows, row_tile),),
        in_specs=[pl.BlockSpec((row_tile, cols), lambda i: (i, 0))],
        out_specs=pl.BlockSpec((row_tile, cols), lambda i: (i, 0)),
        compiler_params=pltpu.CompilerParams(
            dimension_semantics=("parallel",),
            vmem_limit_bytes=vmem_limit,
        ),
        cost_estimate=pl.CostEstimate(
            flops=0, transcendentals=0, bytes_accessed=2 * n_bytes),
    )(x2d)


def _identity_copy_impl(x):
    """Identity that materializes a fresh output buffer (lane-dense tiled copy)."""
    orig_shape = x.shape
    n = x.size
    if n == 0:
        return x

    itemsize = jnp.dtype(x.dtype).itemsize
    n_bytes = n * itemsize
    tile_bytes, vmem_limit = _gen_params()
    sub = _min_sublane(itemsize)

    if n % _LANE == 0:
        cols = _choose_cols(n)                 # lane-dense, divides n exactly
    elif n_bytes <= _SMALL_BYTES:
        cols = n                               # one full-extent (1, n) block
    else:
        # TODO(synk): large tensors whose size is not divisible by 128 fall back
        # to a (possibly lane-sparse) divisor layout; an aligned-prefix + tail
        # split would preserve lane density for these rare shapes.
        cols = _largest_divisor(n, _MAX_COLS)

    rows = n // cols
    max_rows = max(1, tile_bytes // (cols * itemsize))
    row_tile = min(rows, max(sub, (max_rows // sub) * sub))
    # Guarantee >= 2 grid blocks whenever possible so both of v7x's TensorCores
    # (and the software pipeline generally) get work.
    if row_tile >= rows and rows >= 2 * sub:
        row_tile = ((rows + 1) // 2 + sub - 1) // sub * sub

    x2d = x.reshape(rows, cols)    # free bitcast under jit: no extra HBM pass
    out2d = _tiled_copy(x2d, row_tile, vmem_limit, n_bytes)
    return out2d.reshape(orig_shape)


identity_copy = jax.jit(_identity_copy_impl)


if __name__ == "__main__":
    key = jax.random.PRNGKey(0)
    # Small NCHW input, consistent with typical conv-module usage.
    x = jax.random.normal(key, (2, 4, 16, 16), dtype=jnp.float32)

    # 1) Primary no-data-movement path (aliased no-op kernel).
    y = identity(x)
    jax.block_until_ready(y)
    assert y.shape == x.shape and y.dtype == x.dtype
    assert bool(jnp.all(y == x))

    # 2) Donating, truly in-place variant (x is consumed; compare vs host copy).
    x_host = jax.device_get(x)
    y_inplace = identity_donated(x)
    jax.block_until_ready(y_inplace)
    assert bool(jnp.all(y_inplace == jnp.asarray(x_host)))

    # 3) Explicit-copy fallback (fresh output buffer), f32 tiling path.
    x2 = jnp.asarray(x_host)
    yc = identity_copy(x2)
    jax.block_until_ready(yc)
    assert yc.shape == x2.shape and yc.dtype == x2.dtype
    assert bool(jnp.all(yc == x2))

    # 4) dtype-aware tiling path (bf16 has a (16, 128) minimum tile).
    xb = x2.astype(jnp.bfloat16)
    yb = identity_copy(xb)
    jax.block_until_ready(yb)
    assert yb.shape == xb.shape and yb.dtype == xb.dtype
    assert bool(jnp.all(yb == xb))

    print("KERNEL_OK")
</pallas_src>

<mosaic_0001>
module attributes {stable_mosaic.version = 11 : i64} {
  func.func @_identity_alias_kernel(%arg0: memref<2x4x16x16xf32, #tpu.memory_space<any>>, %arg1: memref<2x4x16x16xf32, #tpu.memory_space<any>>) attributes {dimension_semantics = [], scalar_prefetch = 0 : i64, scratch_operands = 0 : i64, tpu.core_type = #tpu.core_type<tc>} {
    return
  }
}

</mosaic_0001>

<bundles_post_ra>
// kernel: _identity_impl.1
= control target key start
LH: loop header
LB: loop body
LE: loop exit
PB: predicated region body
PF: predicated region fallthrough
CT: control target
= control target key end

     0   :  { %s16_s0 = inlined_call_operand.hbm [shape: f32[2,4,16,16], index: 0, kind: input, shape index: {}, may-alias: {0,1}]   ;;  %s17_s1 = inlined_call_operand.hbm [shape: f32[2,4,16,16], index: 1, kind: output, shape index: {}, may-alias: {0,1}]  }

</bundles_post_ra>
